<compile_context>
chip_gen: v5e
topology: v5e:2x2
jax: 0.10.0
libtpu: 0.0.40
codegen_flags: <defaults>
</compile_context>

<pallas_src>
import jax
import jax.numpy as jnp
from jax.experimental import pallas as pl
from jax.experimental.pallas import tpu as pltpu


def _mask_head_kernel(x_ref, w_ref, b_ref, o_ref):
    # x_ref: VMEM (B, C, THW)   w_ref: SMEM (C,)   b_ref: SMEM (1,)
    # o_ref: VMEM (B, THW)
    C = x_ref.shape[1]
    # Unrolled per-channel scalar * vector FMA on the VPU (C is small & static).
    acc = x_ref[:, 0, :].astype(jnp.float32) * w_ref[0]
    for c in range(1, C):
        acc = acc + x_ref[:, c, :].astype(jnp.float32) * w_ref[c]
    o_ref[...] = (acc + b_ref[0]).astype(o_ref.dtype)


def _round_up(x, m):
    return ((x + m - 1) // m) * m


def _choose_spatial_tile(B, C, HW, itemsize,
                         max_tile_lanes=8192, vmem_budget_bytes=16 << 20):
    """Pick a lane tile (multiple of 128) and the padded spatial extent."""
    hw128 = _round_up(HW, 128)
    # Account for sublane padding when estimating the VMEM footprint per lane:
    # double-buffered input block + double-buffered f32 output block.
    c_pad = _round_up(C, 8)
    b_pad = _round_up(B, 8)
    bytes_per_lane = 2 * B * c_pad * itemsize + 2 * b_pad * 4
    cap = max(128, min(max_tile_lanes,
                       (vmem_budget_bytes // bytes_per_lane) // 128 * 128))
    if hw128 <= cap:
        thw = hw128
        # v7x has 2 TensorCores: with enough spatial extent, split into (at
        # least) 2 parallel grid steps so both cores get work.
        if hw128 >= 2048 and hw128 % 256 == 0:
            thw = hw128 // 2
    else:
        thw = cap
    hw_padded = _round_up(hw128, thw)
    return thw, hw_padded


def mask_head_conv1x1(x_nchw, weight, bias):
    """1x1 conv with out_channels=1 (the mask head), via Pallas.

    x_nchw: (B, C, H, W)
    weight: (1, C, 1, 1)   (PyTorch Conv2d weight layout)
    bias:   (1,)
    returns: (B, 1, H, W)
    """
    B, C, H, W = x_nchw.shape
    HW = H * W
    itemsize = x_nchw.dtype.itemsize

    thw, hw_padded = _choose_spatial_tile(B, C, HW, itemsize)
    num_tiles = hw_padded // thw

    x_flat = x_nchw.reshape(B, C, HW)
    if hw_padded != HW:
        x_flat = jnp.pad(x_flat, ((0, 0), (0, 0), (0, hw_padded - HW)))

    w_vec = weight.reshape(C).astype(jnp.float32)
    b_vec = bias.reshape(1).astype(jnp.float32)

    # Explicit VMEM request: double-buffered (sublane-padded) in/out blocks
    # plus headroom; stays within v7x's 32 MiB default scoped limit.
    c_pad = _round_up(C, 8)
    b_pad = _round_up(B, 8)
    vmem_needed = 2 * thw * (B * c_pad * itemsize + b_pad * 4)
    vmem_limit = int(min(max(vmem_needed + (2 << 20), 8 << 20), 32 << 20))

    cost = pl.CostEstimate(
        flops=2 * B * C * hw_padded,
        transcendentals=0,
        bytes_accessed=(B * C * hw_padded + B * hw_padded) * itemsize + (C + 1) * 4,
    )

    out = pl.pallas_call(
        _mask_head_kernel,
        out_shape=jax.ShapeDtypeStruct((B, hw_padded), x_nchw.dtype),
        grid_spec=pltpu.PrefetchScalarGridSpec(
            num_scalar_prefetch=0,
            grid=(num_tiles,),
            in_specs=[
                pl.BlockSpec((B, C, thw), lambda i: (0, 0, i)),
                pl.BlockSpec(memory_space=pltpu.MemorySpace.SMEM),  # weight (C,)
                pl.BlockSpec(memory_space=pltpu.MemorySpace.SMEM),  # bias (1,)
            ],
            out_specs=pl.BlockSpec((B, thw), lambda i: (0, i)),
        ),
        compiler_params=pltpu.CompilerParams(
            dimension_semantics=("parallel",),
            vmem_limit_bytes=vmem_limit,
        ),
        cost_estimate=cost,
    )(x_flat, w_vec, b_vec)

    return out[:, :HW].reshape(B, 1, H, W)


def image_conv_mask_decoder_forward(multiscale, classified_scale, weight, bias):
    """Mirrors ImageConv_MaskDecoder.forward."""
    x = multiscale[classified_scale]           # (B, C, H, W)
    batch_size = x.shape[0]
    pred_masks = mask_head_conv1x1(x, weight, bias)
    # torch.tensor([1, 0])[None, None, :].repeat(B, 1, 1)
    # (int64 in PyTorch; int32 here under JAX default x64-disabled config)
    pred_classes = jnp.tile(
        jnp.array([1, 0], dtype=jnp.int32)[None, None, :], (batch_size, 1, 1)
    )
    return {"pred_masks": pred_masks, "pred_classes": pred_classes}


if __name__ == "__main__":
    # Small shapes consistent with the module: batch=2, scale_dim=4, spatial=16
    B, C, H, W = 2, 4, 16, 16
    classified_scale = "res2"

    key = jax.random.PRNGKey(0)
    kx, kw, kb = jax.random.split(key, 3)

    x = jax.random.normal(kx, (B, C, H, W), dtype=jnp.float32)
    # Deterministic synthetic Conv2d(scale_dim, 1, kernel_size=1) parameters.
    weight = jax.random.normal(kw, (1, C, 1, 1), dtype=jnp.float32) * 0.1
    bias = jax.random.normal(kb, (1,), dtype=jnp.float32) * 0.1

    multiscale = {classified_scale: x}

    out = image_conv_mask_decoder_forward(multiscale, classified_scale, weight, bias)
    jax.block_until_ready(out["pred_masks"])
    jax.block_until_ready(out["pred_classes"])

    # Reference check (plain JAX 1x1 conv).
    ref = jnp.einsum("bchw,c->bhw", x, weight.reshape(C)) + bias[0]
    ref = ref[:, None, :, :]
    assert out["pred_masks"].shape == (B, 1, H, W)
    assert out["pred_classes"].shape == (B, 1, 2)
    assert jnp.allclose(out["pred_masks"], ref, atol=1e-5, rtol=1e-5)
    assert jnp.array_equal(out["pred_classes"][0, 0],
                           jnp.array([1, 0], dtype=jnp.int32))

    print("KERNEL_OK")
</pallas_src>

<mosaic_0001>
module attributes {stable_mosaic.version = 11 : i64} {
  func.func @_mask_head_kernel(%arg0: i32, %arg1: memref<2x4x256xf32, #tpu.memory_space<vmem>>, %arg2: memref<4xf32, #tpu.memory_space<smem>>, %arg3: memref<1xf32, #tpu.memory_space<smem>>, %arg4: memref<2x256xf32, #tpu.memory_space<vmem>>) attributes {dimension_semantics = [#tpu.dimension_semantics<parallel>], iteration_bounds = array<i64: 1>, scalar_prefetch = 0 : i64, scratch_operands = 0 : i64, tpu.core_type = #tpu.core_type<tc>, window_params = [{transform_indices = @transform_0, window_bounds = array<i64: 2, 4, 256>}, {transform_indices = @transform_1, window_bounds = array<i64: 4>}, {transform_indices = @transform_2, window_bounds = array<i64: 1>}, {transform_indices = @transform_3, window_bounds = array<i64: 2, 256>}]} {
    %c0 = arith.constant 0 : index
    %c0_0 = arith.constant 0 : index
    %c0_1 = arith.constant 0 : index
    %0 = vector.load %arg1[%c0, %c0_0, %c0_1] : memref<2x4x256xf32, #tpu.memory_space<vmem>>, vector<2x1x256xf32>
    %1 = vector.shape_cast %0 : vector<2x1x256xf32> to vector<2x256xf32>
    %c0_2 = arith.constant 0 : index
    %2 = memref.load %arg2[%c0_2] : memref<4xf32, #tpu.memory_space<smem>>
    %3 = vector.broadcast %2 : f32 to vector<2x256xf32>
    %4 = arith.mulf %1, %3 : vector<2x256xf32>
    %c0_3 = arith.constant 0 : index
    %c1 = arith.constant 1 : index
    %c0_4 = arith.constant 0 : index
    %5 = vector.load %arg1[%c0_3, %c1, %c0_4] : memref<2x4x256xf32, #tpu.memory_space<vmem>>, vector<2x1x256xf32>
    %6 = vector.shape_cast %5 : vector<2x1x256xf32> to vector<2x256xf32>
    %c1_5 = arith.constant 1 : index
    %7 = memref.load %arg2[%c1_5] : memref<4xf32, #tpu.memory_space<smem>>
    %8 = vector.broadcast %7 : f32 to vector<2x256xf32>
    %9 = arith.mulf %6, %8 : vector<2x256xf32>
    %10 = arith.addf %4, %9 : vector<2x256xf32>
    %c0_6 = arith.constant 0 : index
    %c2 = arith.constant 2 : index
    %c0_7 = arith.constant 0 : index
    %11 = vector.load %arg1[%c0_6, %c2, %c0_7] : memref<2x4x256xf32, #tpu.memory_space<vmem>>, vector<2x1x256xf32>
    %12 = vector.shape_cast %11 : vector<2x1x256xf32> to vector<2x256xf32>
    %c2_8 = arith.constant 2 : index
    %13 = memref.load %arg2[%c2_8] : memref<4xf32, #tpu.memory_space<smem>>
    %14 = vector.broadcast %13 : f32 to vector<2x256xf32>
    %15 = arith.mulf %12, %14 : vector<2x256xf32>
    %16 = arith.addf %10, %15 : vector<2x256xf32>
    %c0_9 = arith.constant 0 : index
    %c3 = arith.constant 3 : index
    %c0_10 = arith.constant 0 : index
    %17 = vector.load %arg1[%c0_9, %c3, %c0_10] : memref<2x4x256xf32, #tpu.memory_space<vmem>>, vector<2x1x256xf32>
    %18 = vector.shape_cast %17 : vector<2x1x256xf32> to vector<2x256xf32>
    %c3_11 = arith.constant 3 : index
    %19 = memref.load %arg2[%c3_11] : memref<4xf32, #tpu.memory_space<smem>>
    %20 = vector.broadcast %19 : f32 to vector<2x256xf32>
    %21 = arith.mulf %18, %20 : vector<2x256xf32>
    %22 = arith.addf %16, %21 : vector<2x256xf32>
    %c0_12 = arith.constant 0 : index
    %23 = memref.load %arg3[%c0_12] : memref<1xf32, #tpu.memory_space<smem>>
    %24 = vector.broadcast %23 : f32 to vector<2x256xf32>
    %25 = arith.addf %22, %24 : vector<2x256xf32>
    %c0_13 = arith.constant 0 : index
    %c0_14 = arith.constant 0 : index
    %26 = vector.load %arg4[%c0_13, %c0_14] : memref<2x256xf32, #tpu.memory_space<vmem>>, vector<2x256xf32>
    tpu.vector_store %arg4[%c0_13, %c0_14], %25 {strides = array<i32>} : memref<2x256xf32, #tpu.memory_space<vmem>>, vector<2x256xf32>,
    return
  }
  func.func @transform_0(%arg0: i32) -> (i32, i32, i32) {
    %c0_i32 = arith.constant 0 : i32
    %c0_i32_0 = arith.constant 0 : i32
    %c0_i32_1 = arith.constant 0 : i32
    return %c0_i32, %c0_i32_0, %arg0 : i32, i32, i32
  }
  func.func @transform_1(%arg0: i32) -> i32 {
    %c0_i32 = arith.constant 0 : i32
    %c0_i32_0 = arith.constant 0 : i32
    return %c0_i32 : i32
  }
  func.func @transform_2(%arg0: i32) -> i32 {
    %c0_i32 = arith.constant 0 : i32
    %c0_i32_0 = arith.constant 0 : i32
    return %c0_i32 : i32
  }
  func.func @transform_3(%arg0: i32) -> (i32, i32) {
    %c0_i32 = arith.constant 0 : i32
    %c0_i32_0 = arith.constant 0 : i32
    return %c0_i32, %arg0 : i32, i32
  }
}

</mosaic_0001>

<bundles_post_ra>
// kernel: tpu_custom_call.1
= control target key start
LH: loop header
LB: loop body
LE: loop exit
PB: predicated region body
PF: predicated region fallthrough
CT: control target
= control target key end

     0   :  { %9 = vsyncpa [#allocation4], 0  ;;  %s223_s0 = inlined_call_operand.hbm [shape: f32[2,4,256], index: 0, kind: input, shape index: {}]   ;;  %s224_s1 = inlined_call_operand.vmem [shape: f32[4], index: 1, kind: input, shape index: {}]   ;;  %s225_s2 = inlined_call_operand.<no memory space> [shape: f32[1], index: 2, kind: input, shape index: {}]   ;;  %s226_s3 = inlined_call_operand.hbm [shape: f32[2,256], index: 3, kind: output, shape index: {}]  }
   0x1   :  { %10 = vsyncpa [#allocation6], 0 }
   0x2   :  { %11 = vsyncpa [#allocation5], 0  ;;  %s16_s14 = sshll.u32 %s223_s0, 4  ;;  %s186_s15 = smov [#allocation3]   ;;  %s17_s14 = int_to_ptr.hbm [resolvable:$true] %s16_s14 }
   0x3   :  { %s18_s16 = sshll.u32 %s186_s15, 4  ;;  %s30_s19 = sshll.u32 %s224_s1, 4  ;;  %s19_s16 = int_to_ptr.vmem [resolvable:$true] %s18_s16  ;;  %s31_s19 = int_to_ptr.vmem [resolvable:$true] %s30_s19 }
   0x4   :  { %s187_s20 = smov 128   ;;  %s188_s21 = smov 8  }
   0x5   :  { %24 = dma.hbm_to_vmem [thread:$0]  %s17_s14, 256, %s19_s16, [#allocation4], %s187_s20, %s187_s20, %s188_s21  }
   0x6   :  { %s189_s22 = smov [#allocation7]  }
   0x7   :  { %33 = dma.vmem_to_smem %s31_s19, 16, %s189_s22, [#allocation6]  }
   0x8   :  { %180 = dma.done.wait [#allocation4], 256  }
   0x9   :  { %181 = vsyncadd [#allocation4], 4294967040 }
   0xa   :  { %182 = dma.done.wait [#allocation6], 16  }
   0xb   :  { %183 = vsyncadd [#allocation6], 4294967280 }
   0xc   :  { %44 = sfence }
   0xd   :  { %s48_s0 = sld [smem:[#allocation7]]  ;;  %v45_v0 = vld [vmem:[#allocation3] ss:$4 sm:$0x3]  ;;  %v83_v24 = vstv %s225_s2  ;;  %s190_s27 = smov [#allocation8]  }
   0xe   :  { %s112_s23 = sld [smem:[#allocation7 + $0x1]]  ;;  %v47_v1 = vld [vmem:[#allocation3 + $0x8] ss:$4 sm:$0x3]  ;;  %s99_s28 = sshll.u32 %s190_s27, 4  ;;  %s100_s28 = int_to_ptr.vmem [resolvable:$true] %s99_s28 }
   0xf   :  { %s113_s24 = sld [smem:[#allocation7 + $0x2]]  ;;  %v53_v2 = vld [vmem:[#allocation3 + $0x1] ss:$4 sm:$0x3]  ;;  %s101_s4 = sshll.u32 %s226_s3, 4  ;;  %s102_s4 = int_to_ptr.hbm [resolvable:$true] %s101_s4 }
  0x10   :  { %s114_s25 = sld [smem:[#allocation7 + $0x3]]  ;;  %v55_v3 = vld [vmem:[#allocation3 + $0x9] ss:$4 sm:$0x3] }
  0x11   :  { %v63_v5 = vld [vmem:[#allocation3 + $0x2] ss:$4 sm:$0x3]  ;;  %v65_v6 = vld [vmem:[#allocation3 + $0xa] ss:$4 sm:$0x3] }
  0x12   :  { %v73_v9 = vld [vmem:[#allocation3 + $0x3] ss:$4 sm:$0x3]  ;;  %v75_v11 = vld [vmem:[#allocation3 + $0xb] ss:$4 sm:$0x3] }
  0x13   :  { %v49_v4 = vstv %s48_s0 }
  0x14   :  { %v50_v7 = vmul.f32 %v49_v4, %v45_v0  ;;  %v57_v8 = vstv %s112_s23  ;;  %v51_v10 = vmul.f32 %v49_v4, %v47_v1 }
  0x15   :  { %v58_v12 = vmul.f32 %v57_v8, %v53_v2  ;;  %v67_v13 = vstv %s113_s24  ;;  %v59_v14 = vmul.f32 %v57_v8, %v55_v3 }
  0x16   :  { %v68_v15 = vmul.f32 %v67_v13, %v63_v5  ;;  %v77_v16 = vstv %s114_s25  ;;  %v69_v17 = vmul.f32 %v67_v13, %v65_v6 }
  0x17   :  { %v60_v18 = vadd.f32 %v58_v12, %v50_v7  ;;  %v78_v19 = vmul.f32 %v77_v16, %v73_v9  ;;  %v61_v20 = vadd.f32 %v59_v14, %v51_v10  ;;  %v79_v21 = vmul.f32 %v77_v16, %v75_v11 }
  0x19   :  { %v70_v22 = vadd.f32 %v68_v15, %v60_v18  ;;  %v71_v23 = vadd.f32 %v69_v17, %v61_v20 }
  0x1b   :  { %v80_v25 = vadd.f32 %v78_v19, %v70_v22  ;;  %v81_v26 = vadd.f32 %v79_v21, %v71_v23 }
  0x1d   :  { %v84_v27 = vadd.f32 %v83_v24, %v80_v25  ;;  %v85_v28 = vadd.f32 %v83_v24, %v81_v26 }
  0x1f   :  { %88 = vst [vmem:[#allocation1] ss:$2 sm:$0xff] %v84_v27 }
  0x20   :  { %90 = vst [vmem:[#allocation1 + $0x1] ss:$2 sm:$0xff] %v85_v28 }
  0x27   :  { %v91_v29 = vld [vmem:[#allocation1] sm:$0xff] }
  0x28   :  { %93 = vst [vmem:[#allocation8] sm:$0xf] %v91_v29 }
  0x29   :  { %104 = dma.vmem_to_hbm [thread:$0]  %s100_s28, 64, %s102_s4, [#allocation5]  }
  0x2a   :  { %184 = dma.done.wait [#allocation5], 64  }
  0x2b   :  { %185 = vsyncadd [#allocation5], 4294967232 }
  0x2c   :  { %109 = vsyncpa [#allocation4], 1 }
  0x2d   :  { %110 = vsyncpa [#allocation5], 1 }
  0x2e   :  { %111 = vsyncpa [#allocation6], 1 }

</bundles_post_ra>
